<compile_context>
chip_gen: v7x
topology: tpu7x:2x2x1
jax: 0.10.0
libtpu: 0.0.40
codegen_flags: <defaults>
</compile_context>

<pallas_src>
import numpy as np
import jax
import jax.numpy as jnp
from jax.experimental import pallas as pl
from jax.experimental.pallas import tpu as pltpu


_VMEM_LIMIT = 32 * 1024 * 1024  # explicit scoped-VMEM budget (safe on v5e/v6e/v7x)


def _round_up(x, m):
    return ((x + m - 1) // m) * m


# ---------------------------------------------------------------------------
# Pallas kernels
# ---------------------------------------------------------------------------
def _branch_kernel(p_ref, wb_ref, bb_ref, wo_ref, z_ref):
    """Per-branch: (pooled @ W_branch + b) -> ReLU -> @ W_out_slice.

    p_ref:  (1, R, C)   bf16  pooled pixels (row-padded), pixel-major
    wb_ref: (1, C, RD)  bf16  branch conv weight with BN scale folded in
    bb_ref: (1, 1, RD)  f32   branch folded BN bias
    wo_ref: (1, RD, OC) bf16  out-conv slice (BN scale folded) for this branch
    z_ref:  (1, R, OC)  f32   projected branch contribution (pre-upsample)
    """
    y = jnp.dot(p_ref[0], wb_ref[0], preferred_element_type=jnp.float32)
    y = jnp.maximum(y + bb_ref[0], 0.0)                      # f32 epilogue
    z = jnp.dot(y.astype(wo_ref.dtype), wo_ref[0],
                preferred_element_type=jnp.float32)
    z_ref[0] = z.astype(z_ref.dtype)


def _outconv_kernel(x_ref, w_ref, bsum_ref, bias_ref, o_ref):
    """Channel-major identity-slice out_conv fused with branch sum + BN + ReLU.

    x_ref:    (1, C, TP)   bf16  input pixels (channel-major tile)
    w_ref:    (OC, C)      bf16  W_out[:C]^T with BN scale folded in
    bsum_ref: (1, OC, TP)  f32   summed upsampled branch contributions
    bias_ref: (OC, 1)      f32   folded out-conv BN bias
    o_ref:    (1, OC, TP)  f32
    """
    acc = jnp.dot(w_ref[...], x_ref[0], preferred_element_type=jnp.float32)
    y = acc + bsum_ref[0] + bias_ref[...]
    o_ref[0] = jnp.maximum(y, 0.0).astype(o_ref.dtype)


# ---------------------------------------------------------------------------
# pallas_call wrappers
# ---------------------------------------------------------------------------
def branch_convs(pooled_all, wb_all, bias_all, wo_all):
    """One launch for all pyramid branches. pooled_all: (n_bins, R, C) bf16."""
    n_bins, R, C = pooled_all.shape
    RD = wb_all.shape[-1]
    OC = wo_all.shape[-1]
    return pl.pallas_call(
        _branch_kernel,
        out_shape=jax.ShapeDtypeStruct((n_bins, R, OC), jnp.float32),
        grid_spec=pltpu.PrefetchScalarGridSpec(
            num_scalar_prefetch=0,
            grid=(n_bins,),
            in_specs=[
                pl.BlockSpec((1, R, C), lambda i: (i, 0, 0)),
                pl.BlockSpec((1, C, RD), lambda i: (i, 0, 0)),
                pl.BlockSpec((1, 1, RD), lambda i: (i, 0, 0)),
                pl.BlockSpec((1, RD, OC), lambda i: (i, 0, 0)),
            ],
            out_specs=pl.BlockSpec((1, R, OC), lambda i: (i, 0, 0)),
        ),
        compiler_params=pltpu.CompilerParams(
            dimension_semantics=("parallel",),
            vmem_limit_bytes=_VMEM_LIMIT),
    )(pooled_all, wb_all, bias_all, wo_all)


def out_conv(x_cm, w0t, branch_sum, bias_o, *, pixel_tile=512):
    """x_cm: (N, C, HW) bf16; w0t: (OC, C) bf16; branch_sum: (N, OC, HW) f32."""
    N, C, HW = x_cm.shape
    OC = w0t.shape[0]
    tp = HW
    for cand in (pixel_tile, 256, 128):
        if cand <= HW and HW % cand == 0:
            tp = cand
            break
    grid = (N, HW // tp)
    return pl.pallas_call(
        _outconv_kernel,
        out_shape=jax.ShapeDtypeStruct((N, OC, HW), jnp.float32),
        grid_spec=pltpu.PrefetchScalarGridSpec(
            num_scalar_prefetch=0,
            grid=grid,
            in_specs=[
                pl.BlockSpec((1, C, tp), lambda n, j: (n, 0, j)),
                pl.BlockSpec((OC, C), lambda n, j: (0, 0)),
                pl.BlockSpec((1, OC, tp), lambda n, j: (n, 0, j)),
                pl.BlockSpec((OC, 1), lambda n, j: (0, 0)),
            ],
            out_specs=pl.BlockSpec((1, OC, tp), lambda n, j: (n, 0, j)),
        ),
        compiler_params=pltpu.CompilerParams(
            dimension_semantics=("parallel", "parallel"),
            vmem_limit_bytes=_VMEM_LIMIT),
    )(x_cm, w0t, branch_sum, bias_o)


# ---------------------------------------------------------------------------
# Small linear-map helpers (glue): adaptive avg pool + bilinear resize matrices
# ---------------------------------------------------------------------------
def adaptive_pool_matrix(in_size, out_size):
    """P[i, h] so that pooled = P @ x matches nn.AdaptiveAvgPool along one axis."""
    P = np.zeros((out_size, in_size), np.float32)
    for i in range(out_size):
        start = (i * in_size) // out_size
        end = -((-(i + 1) * in_size) // out_size)  # ceil((i+1)*in/out)
        P[i, start:end] = 1.0 / (end - start)
    return jnp.asarray(P)


def bilinear_matrix(in_size, out_size):
    """R[i, j]: F.interpolate(mode='bilinear', align_corners=True) along one axis."""
    R = np.zeros((out_size, in_size), np.float32)
    if in_size == 1:
        R[:, 0] = 1.0
        return jnp.asarray(R)
    for i in range(out_size):
        src = i * (in_size - 1) / (out_size - 1) if out_size > 1 else 0.0
        lo = int(np.floor(src))
        hi = min(lo + 1, in_size - 1)
        frac = src - lo
        R[i, lo] += 1.0 - frac
        R[i, hi] += frac
    return jnp.asarray(R)


# ---------------------------------------------------------------------------
# Parameter init (deterministic, synthetic) and full PPM forward
# ---------------------------------------------------------------------------
def init_ppm_params(key, in_channel, out_channel, bins, eps=1e-5):
    reduction_dim = in_channel // len(bins)
    keys = jax.random.split(key, 4 * len(bins) + 4)
    params = {"branches": []}
    for i in range(len(bins)):
        w = 0.1 * jax.random.normal(keys[4 * i], (in_channel, reduction_dim), jnp.float32)
        gamma = 1.0 + 0.1 * jax.random.normal(keys[4 * i + 1], (reduction_dim,), jnp.float32)
        beta = 0.02 * jax.random.normal(keys[4 * i + 2], (reduction_dim,), jnp.float32)
        mean = 0.05 * jax.random.normal(keys[4 * i + 3], (reduction_dim,), jnp.float32)
        var = 1.0 + 0.1 * jnp.arange(reduction_dim, dtype=jnp.float32)
        scale = gamma / jnp.sqrt(var + eps)
        bias = beta - mean * scale
        params["branches"].append({"w": w, "scale": scale, "bias": bias})

    w_out = 0.1 * jax.random.normal(keys[-4], (2 * in_channel, out_channel), jnp.float32)
    gamma_o = 1.0 + 0.1 * jax.random.normal(keys[-3], (out_channel,), jnp.float32)
    beta_o = 0.02 * jax.random.normal(keys[-2], (out_channel,), jnp.float32)
    mean_o = 0.05 * jax.random.normal(keys[-1], (out_channel,), jnp.float32)
    var_o = 1.0 + 0.05 * jnp.arange(out_channel, dtype=jnp.float32)
    scale_o = gamma_o / jnp.sqrt(var_o + eps)
    bias_o = beta_o - mean_o * scale_o
    params["out"] = {"w": w_out, "scale": scale_o, "bias": bias_o}
    return params


def ppm_forward(x_nchw, params, bins, image_size):
    """x_nchw: (N, C, H, W) float32.  Returns (N, out_ch, H, W) float32."""
    N, C, H, W = x_nchw.shape
    Ht, Wt = image_size
    assert (Ht, Wt) == (H, W), "concat with the un-resized input requires image_size == (H, W)"
    n_bins = len(bins)
    rd = params["branches"][0]["w"].shape[1]
    OC = params["out"]["w"].shape[1]

    # --- fold BN scales into weights (eval mode); stack per-branch matrices ---
    wout_f = params["out"]["w"] * params["out"]["scale"][None, :]          # (2C, OC)
    w0t = wout_f[:C].T.astype(jnp.bfloat16)                                # (OC, C)
    wb_all = jnp.stack([p["w"] * p["scale"][None, :]
                        for p in params["branches"]]).astype(jnp.bfloat16)  # (nb, C, rd)
    bb_all = jnp.stack([p["bias"].reshape(1, rd)
                        for p in params["branches"]])                       # (nb, 1, rd) f32
    wo_all = jnp.stack([wout_f[C + i * rd: C + (i + 1) * rd]
                        for i in range(n_bins)]).astype(jnp.bfloat16)       # (nb, rd, OC)

    # --- adaptive average pooling (coarse bins derived from the finest when exact) ---
    bmax = max(bins)
    hier = (H % bmax == 0) and (W % bmax == 0) and all(bmax % b == 0 for b in bins)
    pooled = {}
    if hier:
        Ph = adaptive_pool_matrix(H, bmax)
        Pw = adaptive_pool_matrix(W, bmax)
        base = jnp.einsum("ph,nchw,qw->npqc", Ph, x_nchw, Pw)               # (N,bmax,bmax,C)
        for b in bins:
            if b == bmax:
                pooled[b] = base
            else:
                Qh = adaptive_pool_matrix(bmax, b)
                Qw = adaptive_pool_matrix(bmax, b)
                pooled[b] = jnp.einsum("pi,nijc,qj->npqc", Qh, base, Qw)
    else:
        for b in bins:
            Ph = adaptive_pool_matrix(H, b)
            Pw = adaptive_pool_matrix(W, b)
            pooled[b] = jnp.einsum("ph,nchw,qw->npqc", Ph, x_nchw, Pw)

    # --- pack branch rows (padded to a common row count) -> ONE batched pallas_call ---
    max_rows = _round_up(N * bmax * bmax, 8)
    packed = []
    for b in bins:
        rows = pooled[b].reshape(N * b * b, C)
        rows = jnp.pad(rows, ((0, max_rows - rows.shape[0]), (0, 0)))
        packed.append(rows)
    pooled_all = jnp.stack(packed).astype(jnp.bfloat16)                     # (nb, R, C)

    z_all = branch_convs(pooled_all, wb_all, bb_all, wo_all)                # (nb, R, OC) f32

    # --- bilinear upsample (align_corners=True) of the already-projected maps, sum ---
    branch_sum = jnp.zeros((N, OC, H, W), jnp.float32)
    for i, b in enumerate(bins):
        z_b = z_all[i, : N * b * b].reshape(N, b, b, OC)
        Rh = bilinear_matrix(b, Ht)
        Rw = bilinear_matrix(b, Wt)
        branch_sum = branch_sum + jnp.einsum("hp,npqo,wq->nohw", Rh, z_b, Rw)
    branch_sum = branch_sum.reshape(N, OC, H * W)

    # --- full-res out_conv (identity slice) fused with branch sum + BN bias + ReLU ---
    x_cm = x_nchw.reshape(N, C, H * W).astype(jnp.bfloat16)                 # no transpose
    bias_o = params["out"]["bias"].reshape(OC, 1)
    out = out_conv(x_cm, w0t, branch_sum, bias_o)                           # (N, OC, HW)
    return out.reshape(N, OC, H, W)


# ---------------------------------------------------------------------------
# Pure-JAX reference (eval-mode BN, mirrors the PyTorch module structure)
# ---------------------------------------------------------------------------
def ppm_reference(x_nchw, params, bins, image_size):
    N, C, H, W = x_nchw.shape
    Ht, Wt = image_size
    x_nhwc = jnp.transpose(x_nchw, (0, 2, 3, 1))
    feats = [x_nhwc]
    for b, p in zip(bins, params["branches"]):
        Ph = adaptive_pool_matrix(H, b)
        Pw = adaptive_pool_matrix(W, b)
        pooled = jnp.einsum("ph,nhwc,qw->npqc", Ph, x_nhwc, Pw)
        y = jnp.maximum(jnp.einsum("npqc,cd->npqd", pooled, p["w"]) * p["scale"] + p["bias"], 0.0)
        Rh = bilinear_matrix(b, Ht)
        Rw = bilinear_matrix(b, Wt)
        feats.append(jnp.einsum("hp,npqd,wq->nhwd", Rh, y, Rw))
    cat = jnp.concatenate(feats, axis=-1)
    o = params["out"]
    out = jnp.maximum(jnp.einsum("nhwc,cd->nhwd", cat, o["w"]) * o["scale"] + o["bias"], 0.0)
    return jnp.transpose(out, (0, 3, 1, 2))


if __name__ == "__main__":
    key = jax.random.PRNGKey(0)
    k_x, k_p = jax.random.split(key)

    N, C, H, W = 2, 8, 16, 16
    out_channel = 8
    bins = (1, 2, 4, 8)
    image_size = (H, W)

    x = jax.random.normal(k_x, (N, C, H, W), jnp.float32)
    params = init_ppm_params(k_p, C, out_channel, bins)

    fwd = jax.jit(ppm_forward, static_argnames=("bins", "image_size"))
    out = fwd(x, params, bins=bins, image_size=image_size)
    jax.block_until_ready(out)

    assert out.shape == (N, out_channel, H, W), out.shape
    assert bool(jnp.all(jnp.isfinite(out)))
    assert bool(jnp.all(out >= 0.0))  # ReLU output

    ref = ppm_reference(x, params, bins, image_size)
    max_err = float(jnp.max(jnp.abs(out - ref)))
    assert max_err < 5e-2, f"max abs err vs reference: {max_err}"
    print("KERNEL_OK")
</pallas_src>

<mosaic_0001>
module attributes {stable_mosaic.version = 11 : i64} {
  func.func @_branch_kernel(%arg0: i32, %arg1: memref<1x128x8xbf16, #tpu.memory_space<vmem>>, %arg2: memref<1x8x2xbf16, #tpu.memory_space<vmem>>, %arg3: memref<1x1x2xf32, #tpu.memory_space<vmem>>, %arg4: memref<1x2x8xbf16, #tpu.memory_space<vmem>>, %arg5: memref<1x128x8xf32, #tpu.memory_space<vmem>>) attributes {dimension_semantics = [#tpu.dimension_semantics<parallel>], iteration_bounds = array<i64: 4>, scalar_prefetch = 0 : i64, scratch_operands = 0 : i64, tpu.core_type = #tpu.core_type<tc>, window_params = [{transform_indices = @transform_0, window_bounds = array<i64: 1, 128, 8>}, {transform_indices = @transform_1, window_bounds = array<i64: 1, 8, 2>}, {transform_indices = @transform_2, window_bounds = array<i64: 1, 1, 2>}, {transform_indices = @transform_3, window_bounds = array<i64: 1, 2, 8>}, {transform_indices = @transform_4, window_bounds = array<i64: 1, 128, 8>}]} {
    %c0 = arith.constant 0 : index
    %c0_0 = arith.constant 0 : index
    %c0_1 = arith.constant 0 : index
    %0 = vector.load %arg1[%c0, %c0_0, %c0_1] : memref<1x128x8xbf16, #tpu.memory_space<vmem>>, vector<1x128x8xbf16>
    %1 = vector.shape_cast %0 : vector<1x128x8xbf16> to vector<128x8xbf16>
    %c0_2 = arith.constant 0 : index
    %c0_3 = arith.constant 0 : index
    %c0_4 = arith.constant 0 : index
    %2 = vector.load %arg2[%c0_2, %c0_3, %c0_4] : memref<1x8x2xbf16, #tpu.memory_space<vmem>>, vector<1x8x2xbf16>
    %3 = vector.shape_cast %2 : vector<1x8x2xbf16> to vector<8x2xbf16>
    %cst = arith.constant dense<0.000000e+00> : vector<128x2xf32>
    %4 = tpu.matmul %1, %3, %cst {dimension_numbers = #tpu.dot_dimension_numbers<[1], [0], [0], [1], [0, 0, 1, 1], [], []>} : vector<128x8xbf16>, vector<8x2xbf16>, vector<128x2xf32> -> vector<128x2xf32>
    %c0_5 = arith.constant 0 : index
    %c0_6 = arith.constant 0 : index
    %c0_7 = arith.constant 0 : index
    %5 = vector.load %arg3[%c0_5, %c0_6, %c0_7] : memref<1x1x2xf32, #tpu.memory_space<vmem>>, vector<1x1x2xf32>
    %6 = vector.shape_cast %5 : vector<1x1x2xf32> to vector<1x2xf32>
    %7 = vector.broadcast %6 : vector<1x2xf32> to vector<128x2xf32>
    %8 = arith.addf %4, %7 : vector<128x2xf32>
    %cst_8 = arith.constant 0.000000e+00 : f32
    %9 = vector.broadcast %cst_8 : f32 to vector<128x2xf32>
    %10 = arith.maximumf %8, %9 : vector<128x2xf32>
    %11 = arith.truncf %10 : vector<128x2xf32> to vector<128x2xbf16>
    %c0_9 = arith.constant 0 : index
    %c0_10 = arith.constant 0 : index
    %c0_11 = arith.constant 0 : index
    %12 = vector.load %arg4[%c0_9, %c0_10, %c0_11] : memref<1x2x8xbf16, #tpu.memory_space<vmem>>, vector<1x2x8xbf16>
    %13 = vector.shape_cast %12 : vector<1x2x8xbf16> to vector<2x8xbf16>
    %cst_12 = arith.constant dense<0.000000e+00> : vector<128x8xf32>
    %14 = tpu.matmul %11, %13, %cst_12 {dimension_numbers = #tpu.dot_dimension_numbers<[1], [0], [0], [1], [0, 0, 1, 1], [], []>} : vector<128x2xbf16>, vector<2x8xbf16>, vector<128x8xf32> -> vector<128x8xf32>
    %c0_13 = arith.constant 0 : index
    %c0_14 = arith.constant 0 : index
    %c0_15 = arith.constant 0 : index
    %15 = vector.load %arg5[%c0_13, %c0_14, %c0_15] : memref<1x128x8xf32, #tpu.memory_space<vmem>>, vector<1x128x8xf32>
    %16 = vector.shape_cast %15 : vector<1x128x8xf32> to vector<128x8xf32>
    %17 = vector.shape_cast %14 : vector<128x8xf32> to vector<1x128x8xf32>
    tpu.vector_store %arg5[%c0_13, %c0_14, %c0_15], %17 {strides = array<i32>} : memref<1x128x8xf32, #tpu.memory_space<vmem>>, vector<1x128x8xf32>,
    return
  }
  func.func @transform_0(%arg0: i32) -> (i32, i32, i32) {
    %c0_i32 = arith.constant 0 : i32
    %c0_i32_0 = arith.constant 0 : i32
    %c0_i32_1 = arith.constant 0 : i32
    return %arg0, %c0_i32, %c0_i32_0 : i32, i32, i32
  }
  func.func @transform_1(%arg0: i32) -> (i32, i32, i32) {
    %c0_i32 = arith.constant 0 : i32
    %c0_i32_0 = arith.constant 0 : i32
    %c0_i32_1 = arith.constant 0 : i32
    return %arg0, %c0_i32, %c0_i32_0 : i32, i32, i32
  }
  func.func @transform_2(%arg0: i32) -> (i32, i32, i32) {
    %c0_i32 = arith.constant 0 : i32
    %c0_i32_0 = arith.constant 0 : i32
    %c0_i32_1 = arith.constant 0 : i32
    return %arg0, %c0_i32, %c0_i32_0 : i32, i32, i32
  }
  func.func @transform_3(%arg0: i32) -> (i32, i32, i32) {
    %c0_i32 = arith.constant 0 : i32
    %c0_i32_0 = arith.constant 0 : i32
    %c0_i32_1 = arith.constant 0 : i32
    return %arg0, %c0_i32, %c0_i32_0 : i32, i32, i32
  }
  func.func @transform_4(%arg0: i32) -> (i32, i32, i32) {
    %c0_i32 = arith.constant 0 : i32
    %c0_i32_0 = arith.constant 0 : i32
    %c0_i32_1 = arith.constant 0 : i32
    return %arg0, %c0_i32, %c0_i32_0 : i32, i32, i32
  }
}

module attributes {stable_mosaic.version = 11 : i64} {
  func.func @_outconv_kernel(%arg0: i32, %arg1: i32, %arg2: memref<1x8x256xbf16, #tpu.memory_space<vmem>>, %arg3: memref<8x8xbf16, #tpu.memory_space<vmem>>, %arg4: memref<1x8x256xf32, #tpu.memory_space<vmem>>, %arg5: memref<8x1xf32, #tpu.memory_space<vmem>>, %arg6: memref<1x8x256xf32, #tpu.memory_space<vmem>>) attributes {dimension_semantics = [#tpu.dimension_semantics<parallel>, #tpu.dimension_semantics<parallel>], iteration_bounds = array<i64: 2, 1>, scalar_prefetch = 0 : i64, scratch_operands = 0 : i64, tpu.core_type = #tpu.core_type<tc>, window_params = [{transform_indices = @transform_0, window_bounds = array<i64: 1, 8, 256>}, {pipeline_mode = #tpu.pipeline_mode<synchronous>, transform_indices = @transform_1, window_bounds = array<i64: 8, 8>}, {transform_indices = @transform_2, window_bounds = array<i64: 1, 8, 256>}, {pipeline_mode = #tpu.pipeline_mode<synchronous>, transform_indices = @transform_3, window_bounds = array<i64: 8, 1>}, {transform_indices = @transform_4, window_bounds = array<i64: 1, 8, 256>}]} {
    %c0 = arith.constant 0 : index
    %c0_0 = arith.constant 0 : index
    %0 = vector.load %arg3[%c0, %c0_0] : memref<8x8xbf16, #tpu.memory_space<vmem>>, vector<8x8xbf16>
    %c0_1 = arith.constant 0 : index
    %c0_2 = arith.constant 0 : index
    %c0_3 = arith.constant 0 : index
    %1 = vector.load %arg2[%c0_1, %c0_2, %c0_3] : memref<1x8x256xbf16, #tpu.memory_space<vmem>>, vector<1x8x256xbf16>
    %2 = vector.shape_cast %1 : vector<1x8x256xbf16> to vector<8x256xbf16>
    %cst = arith.constant dense<0.000000e+00> : vector<8x256xf32>
    %3 = tpu.matmul %0, %2, %cst {dimension_numbers = #tpu.dot_dimension_numbers<[1], [0], [0], [1], [0, 0, 1, 1], [], []>} : vector<8x8xbf16>, vector<8x256xbf16>, vector<8x256xf32> -> vector<8x256xf32>
    %c0_4 = arith.constant 0 : index
    %c0_5 = arith.constant 0 : index
    %c0_6 = arith.constant 0 : index
    %4 = vector.load %arg4[%c0_4, %c0_5, %c0_6] : memref<1x8x256xf32, #tpu.memory_space<vmem>>, vector<1x8x256xf32>
    %5 = vector.shape_cast %4 : vector<1x8x256xf32> to vector<8x256xf32>
    %6 = arith.addf %3, %5 : vector<8x256xf32>
    %c0_7 = arith.constant 0 : index
    %c0_8 = arith.constant 0 : index
    %7 = vector.load %arg5[%c0_7, %c0_8] : memref<8x1xf32, #tpu.memory_space<vmem>>, vector<8x1xf32>
    %8 = vector.broadcast %7 : vector<8x1xf32> to vector<8x256xf32>
    %9 = arith.addf %6, %8 : vector<8x256xf32>
    %cst_9 = arith.constant 0.000000e+00 : f32
    %10 = vector.broadcast %cst_9 : f32 to vector<8x256xf32>
    %11 = arith.maximumf %9, %10 : vector<8x256xf32>
    %c0_10 = arith.constant 0 : index
    %c0_11 = arith.constant 0 : index
    %c0_12 = arith.constant 0 : index
    %12 = vector.load %arg6[%c0_10, %c0_11, %c0_12] : memref<1x8x256xf32, #tpu.memory_space<vmem>>, vector<1x8x256xf32>
    %13 = vector.shape_cast %12 : vector<1x8x256xf32> to vector<8x256xf32>
    %14 = vector.shape_cast %11 : vector<8x256xf32> to vector<1x8x256xf32>
    tpu.vector_store %arg6[%c0_10, %c0_11, %c0_12], %14 {strides = array<i32>} : memref<1x8x256xf32, #tpu.memory_space<vmem>>, vector<1x8x256xf32>,
    return
  }
  func.func @transform_0(%arg0: i32, %arg1: i32) -> (i32, i32, i32) {
    %c0_i32 = arith.constant 0 : i32
    %c0_i32_0 = arith.constant 0 : i32
    return %arg0, %c0_i32, %arg1 : i32, i32, i32
  }
  func.func @transform_1(%arg0: i32, %arg1: i32) -> (i32, i32) {
    %c0_i32 = arith.constant 0 : i32
    %c0_i32_0 = arith.constant 0 : i32
    %c0_i32_1 = arith.constant 0 : i32
    return %c0_i32, %c0_i32_0 : i32, i32
  }
  func.func @transform_2(%arg0: i32, %arg1: i32) -> (i32, i32, i32) {
    %c0_i32 = arith.constant 0 : i32
    %c0_i32_0 = arith.constant 0 : i32
    return %arg0, %c0_i32, %arg1 : i32, i32, i32
  }
  func.func @transform_3(%arg0: i32, %arg1: i32) -> (i32, i32) {
    %c0_i32 = arith.constant 0 : i32
    %c0_i32_0 = arith.constant 0 : i32
    %c0_i32_1 = arith.constant 0 : i32
    return %c0_i32, %c0_i32_0 : i32, i32
  }
  func.func @transform_4(%arg0: i32, %arg1: i32) -> (i32, i32, i32) {
    %c0_i32 = arith.constant 0 : i32
    %c0_i32_0 = arith.constant 0 : i32
    return %arg0, %c0_i32, %arg1 : i32, i32, i32
  }
}

</mosaic_0001>

<bundles_post_ra>
// kernel: ppm_forward.2
= control target key start
LH: loop header
LB: loop body
LE: loop exit
PB: predicated region body
PF: predicated region fallthrough
CT: control target
= control target key end

     0   :  { %s830_s15 = smov 0   ;;  %s913_s0 = inlined_call_operand.vmem [shape: bf16[4,128,8], index: 0, kind: input, shape index: {}]   ;;  %s914_s1 = inlined_call_operand.vmem [shape: bf16[4,8,2], index: 1, kind: input, shape index: {}]   ;;  %s915_s2 = inlined_call_operand.vmem [shape: f32[4,1,2], index: 2, kind: input, shape index: {}]   ;;  %s916_s3 = inlined_call_operand.vmem [shape: bf16[4,2,8], index: 3, kind: input, shape index: {}]   ;;  %s917_s4 = inlined_call_operand.vmem [shape: f32[4,128,8], index: 4, kind: output, shape index: {}]  }
   0x1 LB: > { %s686_s16 = sadd.s32 4294967295, %s803_s15   ;;  %p690_p0 = scmp.ge.s32.totalorder %s803_s15, 1  ;;  %s803_s15 = sphi %s830_s15, %s14_s15  }
   0x2   : > { %p187_p1 = scmp.lt.s32.totalorder %s803_s15, 5 }
   0x4   : > { %p188_p2 = pnand %p690_p0, %p187_p1 }
   0x5   : > { %p223_p3 = scmp.lt.s32.totalorder (!%p188_p2), %s686_s16, 3  ;;  %vm333_vm0 = vcmask (!%p188_p2), 1043456   ;;  %vm308_vm1 = vcmask (!%p188_p2), 64512   ;;  %vm484_vm2 = vcmask (!%p188_p2), 1040384   ;;  %vm459_vm3 = vcmask (!%p188_p2), 15360  }
   0x6   : > { %191 = sbr.rel (%p188_p2) target bundleno = 483 (0x1e3), region = 36 }
   0xd   : > { %s919_s16 = smov (!%p223_p3, %s686_s16), 3 }
   0xe   : > { %s723_s17 = sshll.u32 %s919_s16, 6  ;;  %s693_s18 = sshll.u32 %s919_s16, 2 }
   0xf   : > { %s227_s21 = scalar_lea.vmem %s913_s0, %s723_s17  ;;  %s231_s24 = scalar_lea.vmem %s914_s1, %s693_s18 }
  0x10   : > { %v260_v0 = vld [vmem:[%s231_s24] sm:$0xf]  ;;  %v790_v3 = vld [vmem:[%s227_s21 + $0x8] sm:$0xff]   ;;  %v791_v4 = vld [vmem:[%s227_s21 + $0x10] sm:$0xff]   ;;  %s237_s27 = scalar_lea.vmem %s916_s3, %s919_s16  ;;  %s234_s30 = scalar_lea.vmem %s915_s2, %s919_s16 }
  0x11   : > { %v789_v1 = vld [vmem:[%s227_s21] sm:$0xff]   ;;  %779 = vmatprep.subr.msk.bf16.mxu0 %vm333_vm0, %v260_v0  ;;  %v335_v2 = vsel %vm333_vm0, %v260_v0, 0  ;;  %v792_v5 = vld [vmem:[%s227_s21 + $0x18] sm:$0xff]   ;;  %v794_v7 = vld [vmem:[%s227_s21 + $0x28] sm:$0xff]   ;;  %s724_s5 = sshll.u32 %s919_s16, 7 }
  0x12   : > { %744 = vmatpush3.bf16.msra.mxu0 %v335_v2  ;;  %745 = vmatprep.mubr.msk.bf16.mxu0 %vm308_vm1, %v789_v1  ;;  %v793_v6 = vld [vmem:[%s227_s21 + $0x20] sm:$0xff]   ;;  %v795_v8 = vld [vmem:[%s227_s21 + $0x30] sm:$0xff]   ;;  %v796_v9 = vld [vmem:[%s227_s21 + $0x38] sm:$0xff]   ;;  %s876_s8 = scalar_lea.vmem %s917_s4, %s724_s5 }
  0x13   : > { %v458_v10 = vld [vmem:[%s237_s27] sm:$0x1] }
  0x14   : > { %780 = vmatprep.subr.msk.bf16.mxu1 %vm484_vm2, %v458_v10  ;;  %v486_v11 = vsel %vm484_vm2, %v458_v10, 0  ;;  %v696_v12 = vld [vmem:[%s234_s30] ss:$0 sm:$0xff] }
  0x15   : > { %746 = vmatmul.mubr.msk.bf16.vlgmr.msra.gmra.mrb[0].mxu0 %vm308_vm1, %v790_v3  ;;  %762 = vmatpush3.bf16.msra.mxu1 %v486_v11 }
  0x16   : > { %749 = vmatprep.mubr.msk.bf16.mxu0 %vm308_vm1, %v791_v4 }
  0x1d   : > { %750 = vmatmul.mubr.msk.bf16.gmra.mrb[4].mxu0 %vm308_vm1, %v792_v5 }
  0x1e   : > { %753 = vmatprep.mubr.msk.bf16.mxu0 %vm308_vm1, %v793_v6 }
  0x25   : > { %754 = vmatmul.mubr.msk.bf16.gmra.mrb[8].mxu0 %vm308_vm1, %v794_v7 }
  0x26   : > { %757 = vmatprep.mubr.msk.bf16.mxu0 %vm308_vm1, %v795_v8 }
  0x2d   : > { %758 = vmatmul.mubr.msk.bf16.gmra.mrb[12].mxu0 %vm308_vm1, %v796_v9 }
  0xe8   : > { %v747_v13 = vpop.f32.mrb[0].mxu0 }
  0xe9   : > { %v380_v14 = vadd.f32 %v747_v13, %v696_v12  ;;  %v371_v15 = vpop.f32.mrb[1].mxu0 }
  0xea   : > { %v372_v16 = vadd.f32 %v696_v12, %v371_v15  ;;  %v748_v17 = vpop.f32.mrb[2].mxu0 }
  0xeb   : > { %v383_v18 = vadd.f32 %v748_v17, %v696_v12  ;;  %v374_v19 = vpop.f32.mrb[3].mxu0  ;;  %v436_v21 = vmax.f32 %v380_v14, 0.0 }
  0xec   : > { %v375_v20 = vadd.f32 %v696_v12, %v374_v19  ;;  %v434_v23 = vmax.f32 %v372_v16, 0.0 }
  0xed   : > { %v437_v22 = vmax.f32 %v383_v18, 0.0 }
  0xee   : > { %v435_v24 = vmax.f32 %v375_v20, 0.0 }
  0xef   : > { %v451_v25 = vpack.c.bf16 %v437_v22, %v436_v21 }
  0xf0   : > { %v751_v26 = vpop.f32.mrb[4].mxu0  ;;  %v450_v27 = vpack.c.bf16 %v435_v24, %v434_v23 }
  0xf1   : > { %v396_v28 = vadd.f32 %v751_v26, %v696_v12  ;;  %v387_v29 = vpop.f32.mrb[5].mxu0 }
  0xf2   : > { %v388_v30 = vadd.f32 %v696_v12, %v387_v29  ;;  %v752_v31 = vpop.f32.mrb[6].mxu0  ;;  %763 = vmatprep.mubr.msk.bf16.mxu1 %vm459_vm3, %v450_v27 }
  0xf3   : > { %v399_v32 = vadd.f32 %v752_v31, %v696_v12  ;;  %v390_v33 = vpop.f32.mrb[7].mxu0  ;;  %764 = vmatmul.mubr.msk.bf16.vlgmr.msra.gmra.mrb[0].mxu1 %vm459_vm3, %v451_v25  ;;  %v440_v35 = vmax.f32 %v396_v28, 0.0 }
  0xf4   : > { %v391_v34 = vadd.f32 %v696_v12, %v390_v33  ;;  %v438_v37 = vmax.f32 %v388_v30, 0.0 }
  0xf5   : > { %v441_v36 = vmax.f32 %v399_v32, 0.0 }
  0xf6   : > { %v439_v38 = vmax.f32 %v391_v34, 0.0 }
  0xf7   : > { %v453_v39 = vpack.c.bf16 %v441_v36, %v440_v35 }
  0xf8   : > { %v452_v40 = vpack.c.bf16 %v439_v38, %v438_v37  ;;  %v755_v41 = vpop.f32.mrb[8].mxu0 }
  0xf9   : > { %v412_v42 = vadd.f32 %v755_v41, %v696_v12  ;;  %v403_v43 = vpop.f32.mrb[9].mxu0 }
  0xfa   : > { %v404_v44 = vadd.f32 %v696_v12, %v403_v43  ;;  %v756_v45 = vpop.f32.mrb[10].mxu0  ;;  %767 = vmatprep.mubr.msk.bf16.mxu1 %vm459_vm3, %v452_v40 }
  0xfb   : > { %v415_v46 = vadd.f32 %v756_v45, %v696_v12  ;;  %v406_v47 = vpop.f32.mrb[11].mxu0  ;;  %768 = vmatmul.mubr.msk.bf16.gmra.mrb[4].mxu1 %vm459_vm3, %v453_v39  ;;  %v444_v49 = vmax.f32 %v412_v42, 0.0 }
  0xfc   : > { %v407_v48 = vadd.f32 %v696_v12, %v406_v47  ;;  %v442_v51 = vmax.f32 %v404_v44, 0.0 }
  0xfd   : > { %v445_v50 = vmax.f32 %v415_v46, 0.0 }
  0xfe   : > { %v443_v52 = vmax.f32 %v407_v48, 0.0 }
  0xff   : > { %v455_v53 = vpack.c.bf16 %v445_v50, %v444_v49 }
 0x100   : > { %v454_v54 = vpack.c.bf16 %v443_v52, %v442_v51  ;;  %v759_v55 = vpop.f32.mrb[12].mxu0 }
 0x101   : > { %v428_v56 = vadd.f32 %v759_v55, %v696_v12  ;;  %v419_v57 = vpop.f32.mrb[13].mxu0 }
 0x102   : > { %v420_v58 = vadd.f32 %v696_v12, %v419_v57  ;;  %v760_v59 = vpop.f32.mrb[14].mxu0  ;;  %771 = vmatprep.mubr.msk.bf16.mxu1 %vm459_vm3, %v454_v54 }
 0x103   : > { %v431_v60 = vadd.f32 %v760_v59, %v696_v12  ;;  %v422_v61 = vpop.f32.mrb[15].mxu0  ;;  %772 = vmatmul.mubr.msk.bf16.gmra.mrb[8].mxu1 %vm459_vm3, %v455_v53  ;;  %v448_v63 = vmax.f32 %v428_v56, 0.0 }
 0x104   : > { %v423_v62 = vadd.f32 %v696_v12, %v422_v61  ;;  %v446_v1 = vmax.f32 %v420_v58, 0.0 }
 0x105   : > { %v449_v0 = vmax.f32 %v431_v60, 0.0 }
 0x106   : > { %v447_v2 = vmax.f32 %v423_v62, 0.0 }
 0x107   : > { %v457_v3 = vpack.c.bf16 %v449_v0, %v448_v63 }
 0x108   : > { %v456_v4 = vpack.c.bf16 %v447_v2, %v446_v1 }
 0x10a   : > { %775 = vmatprep.mubr.msk.bf16.mxu1 %vm459_vm3, %v456_v4 }
 0x10b   : > { %776 = vmatmul.mubr.msk.bf16.gmra.mrb[12].mxu1 %vm459_vm3, %v457_v3 }
 0x1c6   : > { %v765_v5 = vpop.f32.mrb[0].mxu1 }
 0x1c7   : > { %587 = vst.msk [vmem:[%s876_s8 + $0x10] sm:$0xff] %vm308_vm1, %v765_v5  ;;  %v522_v6 = vpop.f32.mrb[1].mxu1 }
 0x1c8   : > { %585 = vst.msk [vmem:[%s876_s8] sm:$0xff] %vm308_vm1, %v522_v6  ;;  %v766_v7 = vpop.f32.mrb[2].mxu1 }
 0x1c9   : > { %588 = vst.msk [vmem:[%s876_s8 + $0x18] sm:$0xff] %vm308_vm1, %v766_v7  ;;  %v525_v8 = vpop.f32.mrb[3].mxu1 }
 0x1ca   : > { %586 = vst.msk [vmem:[%s876_s8 + $0x8] sm:$0xff] %vm308_vm1, %v525_v8 }
 0x1ce   : > { %v769_v9 = vpop.f32.mrb[4].mxu1 }
 0x1cf   : > { %591 = vst.msk [vmem:[%s876_s8 + $0x30] sm:$0xff] %vm308_vm1, %v769_v9  ;;  %v538_v10 = vpop.f32.mrb[5].mxu1 }
 0x1d0   : > { %589 = vst.msk [vmem:[%s876_s8 + $0x20] sm:$0xff] %vm308_vm1, %v538_v10  ;;  %v770_v11 = vpop.f32.mrb[6].mxu1 }
 0x1d1   : > { %592 = vst.msk [vmem:[%s876_s8 + $0x38] sm:$0xff] %vm308_vm1, %v770_v11  ;;  %v541_v12 = vpop.f32.mrb[7].mxu1 }
 0x1d2   : > { %590 = vst.msk [vmem:[%s876_s8 + $0x28] sm:$0xff] %vm308_vm1, %v541_v12 }
 0x1d6   : > { %v773_v13 = vpop.f32.mrb[8].mxu1 }
 0x1d7   : > { %595 = vst.msk [vmem:[%s876_s8 + $0x50] sm:$0xff] %vm308_vm1, %v773_v13  ;;  %v554_v14 = vpop.f32.mrb[9].mxu1 }
 0x1d8   : > { %593 = vst.msk [vmem:[%s876_s8 + $0x40] sm:$0xff] %vm308_vm1, %v554_v14  ;;  %v774_v15 = vpop.f32.mrb[10].mxu1 }
 0x1d9   : > { %596 = vst.msk [vmem:[%s876_s8 + $0x58] sm:$0xff] %vm308_vm1, %v774_v15  ;;  %v557_v16 = vpop.f32.mrb[11].mxu1 }
 0x1da   : > { %594 = vst.msk [vmem:[%s876_s8 + $0x48] sm:$0xff] %vm308_vm1, %v557_v16 }
 0x1de   : > { %v777_v17 = vpop.f32.mrb[12].mxu1 }
 0x1df   : > { %599 = vst.msk [vmem:[%s876_s8 + $0x70] sm:$0xff] %vm308_vm1, %v777_v17  ;;  %v570_v18 = vpop.f32.mrb[13].mxu1 }
 0x1e0   : > { %597 = vst.msk [vmem:[%s876_s8 + $0x60] sm:$0xff] %vm308_vm1, %v570_v18  ;;  %v778_v19 = vpop.f32.mrb[14].mxu1 }
 0x1e1   : > { %600 = vst.msk [vmem:[%s876_s8 + $0x78] sm:$0xff] %vm308_vm1, %v778_v19  ;;  %v573_v20 = vpop.f32.mrb[15].mxu1 }
 0x1e2   : > { %598 = vst.msk [vmem:[%s876_s8 + $0x68] sm:$0xff] %vm308_vm1, %v573_v20 }
 0x1e3 PF: > { %s14_s15 = sadd.s32 1, %s803_s15  }
 0x1e4   : > { %p11_p4 = scmp.ge.s32.totalorder %s14_s15, 6  }
 0x1e6   :  { %13 = sbr.rel (!%p11_p4) target bundleno = 1 (0x1), region = 75 }

// kernel: ppm_forward.3
= control target key start
LH: loop header
LB: loop body
LE: loop exit
PB: predicated region body
PF: predicated region fallthrough
CT: control target
= control target key end

     0   :  { %s550_s15 = smov 0   ;;  %s552_s16 = smov 0   ;;  %s592_s0 = inlined_call_operand.vmem [shape: bf16[2,8,256], index: 0, kind: input, shape index: {}]   ;;  %s593_s1 = inlined_call_operand.vmem [shape: bf16[8,8], index: 1, kind: input, shape index: {}]   ;;  %s594_s2 = inlined_call_operand.vmem [shape: f32[2,8,256], index: 2, kind: input, shape index: {}]   ;;  %s595_s3 = inlined_call_operand.vmem [shape: f32[8,1], index: 3, kind: input, shape index: {}]   ;;  %s596_s4 = inlined_call_operand.vmem [shape: f32[2,8,256], index: 4, kind: output, shape index: {}]  }
   0x1   :  { %s554_s17 = smov 0  }
   0x2 LB: > { %s26_s18 = sadd.s32 1, %s518_s16  ;;  %p456_p0 = scmp.ge.s32.totalorder %s522_s17, 1  ;;  %s522_s17 = sphi %s554_s17, %s14_s17   ;;  %s518_s16 = sphi %s552_s16, %s598_s16   ;;  %s514_s15 = sphi %s550_s15, %s597_s15  }
   0x3   : > { %p28_p1 = scmp.ge.s32.totalorder %s26_s18, 2  ;;  %p200_p2 = scmp.lt.s32.totalorder %s522_s17, 3 }
   0x5   : > { %s600_s18 = smov (%p28_p1, %s26_s18), 0  ;;  %p201_p3 = pnand %p456_p0, %p200_p2 }
   0x6   : > { %p244_p4 = scmp.lt.s32.totalorder (!%p201_p3), %s514_s15, 1  ;;  %v524_v0 = vmov (!%p201_p3), 0   ;;  %v335_v1 = vld [vmem:[%s595_s3] sm:$0xff] (!%p201_p3)  ;;  %vm287_vm0 = vcmask (!%p201_p3), 1043456   ;;  %vm283_vm1 = vcmask (!%p201_p3), 64512  }
   0x7   : > { %204 = sbr.rel (%p201_p3) target bundleno = 244 (0xf4), region = 36  ;;  %326 = vmatprep.mubr.bf16.mxu0 (!%p201_p3), %v524_v0  ;;  %497 = vset.pattern.permute.xlu0 (!%p201_p3), %v524_v0  ;;  %v274_v6 = vld [vmem:[%s593_s1] sm:$0xf] (!%p201_p3) }
   0x8   : > { %338 = vperm.xlu0 (!%p201_p3), %497, %v335_v1  }
   0xe   : > { %s602_s15 = smov (!%p244_p4, %s514_s15), 1 }
   0xf   : > { %s469_s21 = sshll.u32 %s602_s15, 3  ;;  %s470_s27 = sshll.u32 %s602_s15, 4 }
  0x10   : > { %s251_s24 = scalar_lea.vmem %s592_s0, %s469_s21  ;;  %s261_s30 = scalar_lea.vmem %s594_s2, %s470_s27 }
  0x11   : > { %v275_v2 = vld [vmem:[%s251_s24] sm:$0xff]  ;;  %v277_v8 = vld [vmem:[%s261_s30 + $0x8] sm:$0xff]  ;;  %s271_s7 = scalar_lea.vmem %s596_s4, %s470_s27 }
  0x12   : > { %v464_v3 = vcombine.high %v275_v2, %v275_v2  ;;  %v463_v4 = vcombine.low %v275_v2, %v275_v2  ;;  %v276_v7 = vld [vmem:[%s261_s30] sm:$0xff] }
  0x14   : > { %465 = vmatprep.subr.msk.bf16.mxu0 %vm287_vm0, %v464_v3  ;;  %v289_v5 = vsel %vm287_vm0, %v463_v4, 0 }
  0x15   : > { %295 = vmatpush1.bf16.msra.mxu0 %v289_v5 }
  0x18   : > { %466 = vmatmul.mubr.msk.bf16.vlgmr.msra.gmra.mrb[0].mxu0 %vm283_vm1, %v274_v6 }
  0x87   : > { %v339_v10 = vpop.permute.xlu0 %338 }
  0xeb   : > { %v328_v9 = vpop.f32.mrb[0].mxu0 }
  0xec   : > { %v329_v11 = vadd.f32 %v328_v9, %v276_v7  ;;  %v330_v12 = vpop.f32.mrb[1].mxu0 }
  0xed   : > { %v331_v13 = vadd.f32 %v330_v12, %v277_v8  ;;  %v332_v14 = vpop.f32.mrb[2].mxu0 }
  0xee   : > { %v341_v15 = vadd.f32 %v339_v10, %v329_v11  ;;  %v333_v16 = vpop.f32.mrb[3].mxu0 }
  0xef   : > { %v342_v17 = vadd.f32 %v339_v10, %v331_v13 }
  0xf0   : > { %v343_v18 = vmax.f32 %v341_v15, 0.0 }
  0xf1   : > { %v344_v19 = vmax.f32 %v342_v17, 0.0 }
  0xf2   : > { %345 = vst [vmem:[%s271_s7] sm:$0xff] %v343_v18 }
  0xf3   : > { %346 = vst [vmem:[%s271_s7 + $0x8] sm:$0xff] %v344_v19 }
  0xf4 PF: > { %s14_s17 = sadd.s32 1, %s522_s17   ;;  %s597_s15 = smov %s518_s16 }
  0xf5   : > { %p11_p5 = scmp.ge.s32.totalorder %s14_s17, 4   ;;  %s598_s16 = smov %s600_s18 }
  0xf7   :  { %13 = sbr.rel (!%p11_p5) target bundleno = 2 (0x2), region = 69 }

</bundles_post_ra>
